<compile_context>
chip_gen: v6e
topology: v6e:2x2x1
jax: 0.10.0
libtpu: 0.0.40
codegen_flags: <defaults>
</compile_context>

<pallas_src>
import functools
import numpy as np
import jax
import jax.numpy as jnp
from jax.experimental import pallas as pl
from jax.experimental.pallas import tpu as pltpu


# ----------------------------- config ------------------------------------- #
BATCH = 2
SEQ = 8
HIDDEN = 32
NUM_HEADS = 4
HEAD_DIM = HIDDEN // NUM_HEADS          # 8
INTERMEDIATE = 64
RMS_EPS = 1e-8
ROPE_BASE = 10000.0


# ----------------------------- kernel ------------------------------------- #
def llama_block_kernel(x_ref, g1_ref, wqkv_ref, wo_ref, c1_ref, c2_ref, bias_ref,
                       g2_ref, w1g_ref, w1u_ref, w2_ref,
                       out_ref, kcache_ref, vcache_ref,
                       *, hidden, num_heads, head_dim, eps):
    H = hidden
    x = x_ref[0]                                     # (S, H)

    def rmsnorm(v, gamma):
        # torch: rms = ||v||_2 * H^-0.5 ; out = gamma * v / (rms + eps)
        rms = jnp.sqrt(jnp.sum(v * v, axis=-1, keepdims=True)) * (H ** -0.5)
        return gamma * v * (1.0 / (rms + eps))

    # ---- attention branch ----
    h1 = rmsnorm(x, g1_ref[0])                       # (S, H)

    # one fused projection: [q*scale | k | v | q_swap*scale | k_swap]
    qkv = jnp.dot(h1, wqkv_ref[...], preferred_element_type=jnp.float32)   # (S, 5H)
    q    = qkv[:, 0 * H:1 * H]
    k    = qkv[:, 1 * H:2 * H]
    v    = qkv[:, 2 * H:3 * H]
    q_sw = qkv[:, 3 * H:4 * H]
    k_sw = qkv[:, 4 * H:5 * H]

    # RoPE (torch's swapped sin/cos variant), full-width, shuffle-free:
    #   rot(t) = t * c1 + t_partner * c2   with c1 = [sin|sin], c2 = [-cos|cos]
    c1 = c1_ref[...]                                 # (S, H)
    c2 = c2_ref[...]                                 # (S, H)
    q_rot = q * c1 + q_sw * c2                       # already scaled by Dh^-0.5
    k_rot = k * c1 + k_sw * c2                       # unscaled (goes to cache)

    # lane-dense KV-cache writeback; wrapper reshapes to (B, nH, S, Dh)
    kcache_ref[0] = k_rot
    vcache_ref[0] = v

    bias = bias_ref[...]                             # (S, S) additive causal mask

    head_outs = []
    for hh in range(num_heads):
        lo = hh * head_dim
        qh = q_rot[:, lo:lo + head_dim]              # (S, Dh)
        kh = k_rot[:, lo:lo + head_dim]
        vh = v[:, lo:lo + head_dim]
        s = jnp.dot(qh, kh.T, preferred_element_type=jnp.float32) + bias
        m = jnp.max(s, axis=-1, keepdims=True)
        e = jnp.exp(s - m)
        p = e * (1.0 / jnp.sum(e, axis=-1, keepdims=True))
        head_outs.append(jnp.dot(p, vh, preferred_element_type=jnp.float32))

    attn = jnp.concatenate(head_outs, axis=-1)       # (S, H)
    attn = jnp.dot(attn, wo_ref[...], preferred_element_type=jnp.float32)

    xa = x + attn

    # ---- feed-forward branch (SwiGLU); gate/up are separate matmuls ----
    h2 = rmsnorm(xa, g2_ref[0])                      # (S, H)
    x1 = jnp.dot(h2, w1g_ref[...], preferred_element_type=jnp.float32)    # (S, I)
    x2 = jnp.dot(h2, w1u_ref[...], preferred_element_type=jnp.float32)    # (S, I)
    act = x1 * (x2 * jax.nn.sigmoid(x2))             # x1 * silu(x2)
    ff = jnp.dot(act, w2_ref[...], preferred_element_type=jnp.float32)    # (S, H)

    out_ref[0] = xa + ff


# ----------------------------- host-side (one-time) prep ------------------- #
def prepare_operands(params, seq, scaling_factor=1.0):
    """Weight fusion, RoPE-partner columns, sin/cos planes, causal bias."""
    H, nH, Dh, I = HIDDEN, NUM_HEADS, HEAD_DIM, INTERMEDIATE
    half = Dh // 2
    scale = Dh ** (-0.5)

    # RoPE tables matching torch RotaryPositionalEncoding.  Note the module chunks
    # emb = cat(sin, cos) into (cos, sin), so the effective rotation is
    #   x_rot = cat(x1*sin - x2*cos, x1*cos + x2*sin).
    inv_freq = 1.0 / (ROPE_BASE ** (jnp.arange(0, Dh, 2, dtype=jnp.float32) / Dh))
    t = jnp.arange(seq, dtype=jnp.float32) * scaling_factor
    freqs = t[:, None] * inv_freq[None, :]                      # (S, Dh/2)
    sinf, cosf = jnp.sin(freqs), jnp.cos(freqs)

    c1 = jnp.tile(jnp.concatenate([sinf, sinf], axis=-1), (1, nH))    # (S, H)
    c2 = jnp.tile(jnp.concatenate([-cosf, cosf], axis=-1), (1, nH))   # (S, H)

    # per-head half-swap permutation of weight columns (RoPE partner dims)
    idx = np.arange(H).reshape(nH, Dh)
    perm = np.concatenate([idx[:, half:], idx[:, :half]], axis=1).reshape(-1)

    wq_s = params["wq"] * scale                      # fold attention scale into Q
    wqkv = jnp.concatenate(
        [wq_s, params["wk"], params["wv"], wq_s[:, perm], params["wk"][:, perm]],
        axis=1)                                      # (H, 5H)

    # additive causal bias: 0 where visible, -inf above the diagonal
    row = np.arange(seq)[:, None]
    col = np.arange(seq)[None, :]
    bias = jnp.asarray(np.where(col <= row, 0.0, -np.inf), dtype=jnp.float32)

    return {
        "g1": params["g1"], "g2": params["g2"],
        "wqkv": wqkv, "wo": params["wo"],
        "c1": c1, "c2": c2, "bias": bias,
        "w1g": params["w1"][:, :I], "w1u": params["w1"][:, I:],
        "w2": params["w2"],
    }


# ----------------------------- wrapper ------------------------------------ #
def llama_block(x, ops):
    B, S, H = x.shape
    nH, Dh, I = NUM_HEADS, HEAD_DIM, INTERMEDIATE

    kernel = functools.partial(
        llama_block_kernel, hidden=H, num_heads=nH, head_dim=Dh, eps=RMS_EPS)

    rep2 = lambda b: (0, 0)                          # replicated across batch grid

    out, kc, vc = pl.pallas_call(
        kernel,
        out_shape=(
            jax.ShapeDtypeStruct((B, S, H), jnp.float32),   # block output
            jax.ShapeDtypeStruct((B, S, H), jnp.float32),   # K cache (lane-dense)
            jax.ShapeDtypeStruct((B, S, H), jnp.float32),   # V cache (lane-dense)
        ),
        grid=(B,),
        in_specs=[
            pl.BlockSpec((1, S, H), lambda b: (b, 0, 0)),   # x
            pl.BlockSpec((1, H), rep2),                     # norm1 scale
            pl.BlockSpec((H, 5 * H), rep2),                 # fused qkv (+rope partners)
            pl.BlockSpec((H, H), rep2),                     # Wo
            pl.BlockSpec((S, H), rep2),                     # rope c1 plane
            pl.BlockSpec((S, H), rep2),                     # rope c2 plane
            pl.BlockSpec((S, S), rep2),                     # additive causal bias
            pl.BlockSpec((1, H), rep2),                     # norm2 scale
            pl.BlockSpec((H, I), rep2),                     # fc1 gate
            pl.BlockSpec((H, I), rep2),                     # fc1 up
            pl.BlockSpec((I, H), rep2),                     # fc2
        ],
        out_specs=(
            pl.BlockSpec((1, S, H), lambda b: (b, 0, 0)),
            pl.BlockSpec((1, S, H), lambda b: (b, 0, 0)),
            pl.BlockSpec((1, S, H), lambda b: (b, 0, 0)),
        ),
        compiler_params=pltpu.CompilerParams(dimension_semantics=("parallel",)),
    )(x, ops["g1"], ops["wqkv"], ops["wo"], ops["c1"], ops["c2"], ops["bias"],
      ops["g2"], ops["w1g"], ops["w1u"], ops["w2"])

    # lane-dense kernel layout -> torch (B, nH, S, Dh) KV-cache contract
    K = kc.reshape(B, S, nH, Dh).transpose(0, 2, 1, 3)
    V = vc.reshape(B, S, nH, Dh).transpose(0, 2, 1, 3)
    return out, {"K": K, "V": V}


# ----------------------------- pure-JAX reference -------------------------- #
def ref_block(x, params, scaling_factor=1.0):
    B, S, H = x.shape
    nH, Dh, I = NUM_HEADS, HEAD_DIM, INTERMEDIATE

    def rmsnorm(v, g):
        rms = jnp.linalg.norm(v, axis=-1, keepdims=True) * (H ** -0.5)
        return g * v / (rms + RMS_EPS)

    inv_freq = 1.0 / (ROPE_BASE ** (jnp.arange(0, Dh, 2, dtype=jnp.float32) / Dh))
    t = jnp.arange(S, dtype=jnp.float32) * scaling_factor
    freqs = t[:, None] * inv_freq[None, :]
    emb_cos, emb_sin = jnp.sin(freqs), jnp.cos(freqs)   # swapped as in torch code

    def rope(z):                                         # (B, nH, S, Dh)
        z1, z2 = z[..., :Dh // 2], z[..., Dh // 2:]
        return jnp.concatenate(
            [z1 * emb_cos - z2 * emb_sin, z1 * emb_sin + z2 * emb_cos], axis=-1)

    h1 = rmsnorm(x, params["g1"][0])
    Q = (h1 @ params["wq"]).reshape(B, S, nH, Dh).transpose(0, 2, 1, 3)
    K = (h1 @ params["wk"]).reshape(B, S, nH, Dh).transpose(0, 2, 1, 3)
    V = (h1 @ params["wv"]).reshape(B, S, nH, Dh).transpose(0, 2, 1, 3)
    Q, K = rope(Q), rope(K)
    scores = jnp.einsum("bhqd,bhkd->bhqk", Q, K) * (Dh ** -0.5)
    mask = jnp.tril(jnp.ones((S, S), bool))
    scores = jnp.where(mask, scores, -jnp.inf)
    wts = jax.nn.softmax(scores, axis=-1)
    o = jnp.einsum("bhqk,bhkd->bhqd", wts, V).transpose(0, 2, 1, 3).reshape(B, S, H)
    x = x + o @ params["wo"]
    h2 = rmsnorm(x, params["g2"][0])
    g = h2 @ params["w1"]
    a = g[..., :I] * jax.nn.silu(g[..., I:])
    return x + a @ params["w2"], K, V


# ----------------------------- main ---------------------------------------- #
if __name__ == "__main__":
    key = jax.random.PRNGKey(0)
    ks = jax.random.split(key, 8)
    H, I = HIDDEN, INTERMEDIATE

    params = {
        "g1": jnp.ones((1, H), jnp.float32),
        "g2": jnp.ones((1, H), jnp.float32),
        # stored pre-transposed so the kernel computes x @ W
        "wq": jax.random.normal(ks[0], (H, H), jnp.float32) * 0.05,
        "wk": jax.random.normal(ks[1], (H, H), jnp.float32) * 0.05,
        "wv": jax.random.normal(ks[2], (H, H), jnp.float32) * 0.05,
        "wo": jax.random.normal(ks[3], (H, H), jnp.float32) * 0.05,
        "w1": jax.random.normal(ks[4], (H, 2 * I), jnp.float32) * 0.05,
        "w2": jax.random.normal(ks[5], (I, H), jnp.float32) * 0.05,
    }
    x = jax.random.normal(ks[6], (BATCH, SEQ, HIDDEN), jnp.float32)

    ops = prepare_operands(params, SEQ, scaling_factor=1.0)   # one-time prep
    out, kv = llama_block(x, ops)
    out = jax.block_until_ready(out)
    kv = jax.tree_util.tree_map(jax.block_until_ready, kv)

    ref_out, ref_k, ref_v = ref_block(x, params, scaling_factor=1.0)
    np.testing.assert_allclose(np.asarray(out), np.asarray(ref_out),
                               rtol=1e-4, atol=1e-4)
    np.testing.assert_allclose(np.asarray(kv["K"]), np.asarray(ref_k),
                               rtol=1e-4, atol=1e-4)
    np.testing.assert_allclose(np.asarray(kv["V"]), np.asarray(ref_v),
                               rtol=1e-4, atol=1e-4)
    print("KERNEL_OK")
</pallas_src>

<mosaic_0001>
module attributes {stable_mosaic.version = 11 : i64} {
  func.func @llama_block_kernel(%arg0: i32, %arg1: memref<1x8x32xf32, #tpu.memory_space<vmem>>, %arg2: memref<1x32xf32, #tpu.memory_space<vmem>>, %arg3: memref<32x160xf32, #tpu.memory_space<vmem>>, %arg4: memref<32x32xf32, #tpu.memory_space<vmem>>, %arg5: memref<8x32xf32, #tpu.memory_space<vmem>>, %arg6: memref<8x32xf32, #tpu.memory_space<vmem>>, %arg7: memref<8x8xf32, #tpu.memory_space<vmem>>, %arg8: memref<1x32xf32, #tpu.memory_space<vmem>>, %arg9: memref<32x64xf32, #tpu.memory_space<vmem>>, %arg10: memref<32x64xf32, #tpu.memory_space<vmem>>, %arg11: memref<64x32xf32, #tpu.memory_space<vmem>>, %arg12: memref<1x8x32xf32, #tpu.memory_space<vmem>>, %arg13: memref<1x8x32xf32, #tpu.memory_space<vmem>>, %arg14: memref<1x8x32xf32, #tpu.memory_space<vmem>>) attributes {dimension_semantics = [#tpu.dimension_semantics<parallel>], iteration_bounds = array<i64: 2>, scalar_prefetch = 0 : i64, scratch_operands = 0 : i64, tpu.core_type = #tpu.core_type<tc>, window_params = [{transform_indices = @transform_0, window_bounds = array<i64: 1, 8, 32>}, {pipeline_mode = #tpu.pipeline_mode<synchronous>, transform_indices = @transform_1, window_bounds = array<i64: 1, 32>}, {pipeline_mode = #tpu.pipeline_mode<synchronous>, transform_indices = @transform_2, window_bounds = array<i64: 32, 160>}, {pipeline_mode = #tpu.pipeline_mode<synchronous>, transform_indices = @transform_3, window_bounds = array<i64: 32, 32>}, {pipeline_mode = #tpu.pipeline_mode<synchronous>, transform_indices = @transform_4, window_bounds = array<i64: 8, 32>}, {pipeline_mode = #tpu.pipeline_mode<synchronous>, transform_indices = @transform_5, window_bounds = array<i64: 8, 32>}, {pipeline_mode = #tpu.pipeline_mode<synchronous>, transform_indices = @transform_6, window_bounds = array<i64: 8, 8>}, {pipeline_mode = #tpu.pipeline_mode<synchronous>, transform_indices = @transform_7, window_bounds = array<i64: 1, 32>}, {pipeline_mode = #tpu.pipeline_mode<synchronous>, transform_indices = @transform_8, window_bounds = array<i64: 32, 64>}, {pipeline_mode = #tpu.pipeline_mode<synchronous>, transform_indices = @transform_9, window_bounds = array<i64: 32, 64>}, {pipeline_mode = #tpu.pipeline_mode<synchronous>, transform_indices = @transform_10, window_bounds = array<i64: 64, 32>}, {transform_indices = @transform_11, window_bounds = array<i64: 1, 8, 32>}, {transform_indices = @transform_12, window_bounds = array<i64: 1, 8, 32>}, {transform_indices = @transform_13, window_bounds = array<i64: 1, 8, 32>}]} {
    %c0 = arith.constant 0 : index
    %c0_0 = arith.constant 0 : index
    %c0_1 = arith.constant 0 : index
    %0 = vector.load %arg1[%c0, %c0_0, %c0_1] : memref<1x8x32xf32, #tpu.memory_space<vmem>>, vector<1x8x32xf32>
    %1 = vector.shape_cast %0 : vector<1x8x32xf32> to vector<8x32xf32>
    %c0_2 = arith.constant 0 : index
    %c0_3 = arith.constant 0 : index
    %2 = vector.load %arg2[%c0_2, %c0_3] : memref<1x32xf32, #tpu.memory_space<vmem>>, vector<1x32xf32>
    %3 = vector.shape_cast %2 : vector<1x32xf32> to vector<32xf32>
    %4 = arith.mulf %1, %1 : vector<8x32xf32>
    %cst = arith.constant dense<0.000000e+00> : vector<8xf32>
    %5 = vector.multi_reduction <add>, %4, %cst [1] : vector<8x32xf32> to vector<8xf32>
    %6 = vector.shape_cast %5 : vector<8xf32> to vector<8x1xf32>
    %7 = math.sqrt %6 : vector<8x1xf32>
    %cst_4 = arith.constant 0.176776692 : f32
    %8 = vector.broadcast %cst_4 : f32 to vector<8x1xf32>
    %9 = arith.mulf %7, %8 : vector<8x1xf32>
    %10 = vector.shape_cast %3 : vector<32xf32> to vector<1x32xf32>
    %11 = vector.broadcast %10 : vector<1x32xf32> to vector<8x32xf32>
    %12 = arith.mulf %11, %1 : vector<8x32xf32>
    %cst_5 = arith.constant 9.99999993E-9 : f32
    %13 = vector.broadcast %cst_5 : f32 to vector<8x1xf32>
    %14 = arith.addf %9, %13 : vector<8x1xf32>
    %cst_6 = arith.constant 1.000000e+00 : f32
    %15 = vector.broadcast %cst_6 : f32 to vector<8x1xf32>
    %16 = arith.divf %15, %14 : vector<8x1xf32>
    %17 = vector.broadcast %16 : vector<8x1xf32> to vector<8x32xf32>
    %18 = arith.mulf %12, %17 : vector<8x32xf32>
    %c0_7 = arith.constant 0 : index
    %c0_8 = arith.constant 0 : index
    %19 = vector.load %arg3[%c0_7, %c0_8] : memref<32x160xf32, #tpu.memory_space<vmem>>, vector<32x160xf32>
    %cst_9 = arith.constant dense<0.000000e+00> : vector<8x160xf32>
    %20 = tpu.matmul %18, %19, %cst_9 {dimension_numbers = #tpu.dot_dimension_numbers<[1], [0], [0], [1], [0, 0, 1, 1], [], []>} : vector<8x32xf32>, vector<32x160xf32>, vector<8x160xf32> -> vector<8x160xf32>
    %21 = vector.extract_strided_slice %20 {offsets = [0, 0], sizes = [8, 32], strides = [1, 1]} : vector<8x160xf32> to vector<8x32xf32>
    %22 = vector.extract_strided_slice %20 {offsets = [0, 32], sizes = [8, 32], strides = [1, 1]} : vector<8x160xf32> to vector<8x32xf32>
    %23 = vector.extract_strided_slice %20 {offsets = [0, 64], sizes = [8, 32], strides = [1, 1]} : vector<8x160xf32> to vector<8x32xf32>
    %24 = vector.extract_strided_slice %20 {offsets = [0, 96], sizes = [8, 32], strides = [1, 1]} : vector<8x160xf32> to vector<8x32xf32>
    %25 = vector.extract_strided_slice %20 {offsets = [0, 128], sizes = [8, 32], strides = [1, 1]} : vector<8x160xf32> to vector<8x32xf32>
    %c0_10 = arith.constant 0 : index
    %c0_11 = arith.constant 0 : index
    %26 = vector.load %arg5[%c0_10, %c0_11] : memref<8x32xf32, #tpu.memory_space<vmem>>, vector<8x32xf32>
    %c0_12 = arith.constant 0 : index
    %c0_13 = arith.constant 0 : index
    %27 = vector.load %arg6[%c0_12, %c0_13] : memref<8x32xf32, #tpu.memory_space<vmem>>, vector<8x32xf32>
    %28 = arith.mulf %21, %26 : vector<8x32xf32>
    %29 = arith.mulf %24, %27 : vector<8x32xf32>
    %30 = arith.addf %28, %29 : vector<8x32xf32>
    %31 = arith.mulf %22, %26 : vector<8x32xf32>
    %32 = arith.mulf %25, %27 : vector<8x32xf32>
    %33 = arith.addf %31, %32 : vector<8x32xf32>
    %c0_14 = arith.constant 0 : index
    %c0_15 = arith.constant 0 : index
    %c0_16 = arith.constant 0 : index
    %34 = vector.load %arg13[%c0_14, %c0_15, %c0_16] : memref<1x8x32xf32, #tpu.memory_space<vmem>>, vector<1x8x32xf32>
    %35 = vector.shape_cast %34 : vector<1x8x32xf32> to vector<8x32xf32>
    %36 = vector.shape_cast %33 : vector<8x32xf32> to vector<1x8x32xf32>
    tpu.vector_store %arg13[%c0_14, %c0_15, %c0_16], %36 {strides = array<i32>} : memref<1x8x32xf32, #tpu.memory_space<vmem>>, vector<1x8x32xf32>,
    %c0_17 = arith.constant 0 : index
    %c0_18 = arith.constant 0 : index
    %c0_19 = arith.constant 0 : index
    %37 = vector.load %arg14[%c0_17, %c0_18, %c0_19] : memref<1x8x32xf32, #tpu.memory_space<vmem>>, vector<1x8x32xf32>
    %38 = vector.shape_cast %37 : vector<1x8x32xf32> to vector<8x32xf32>
    %39 = vector.shape_cast %23 : vector<8x32xf32> to vector<1x8x32xf32>
    tpu.vector_store %arg14[%c0_17, %c0_18, %c0_19], %39 {strides = array<i32>} : memref<1x8x32xf32, #tpu.memory_space<vmem>>, vector<1x8x32xf32>,
    %c0_20 = arith.constant 0 : index
    %c0_21 = arith.constant 0 : index
    %40 = vector.load %arg7[%c0_20, %c0_21] : memref<8x8xf32, #tpu.memory_space<vmem>>, vector<8x8xf32>
    %41 = vector.extract_strided_slice %30 {offsets = [0, 0], sizes = [8, 8], strides = [1, 1]} : vector<8x32xf32> to vector<8x8xf32>
    %42 = vector.extract_strided_slice %33 {offsets = [0, 0], sizes = [8, 8], strides = [1, 1]} : vector<8x32xf32> to vector<8x8xf32>
    %43 = vector.extract_strided_slice %23 {offsets = [0, 0], sizes = [8, 8], strides = [1, 1]} : vector<8x32xf32> to vector<8x8xf32>
    %44 = tpu.transpose %42, [1, 0] : vector<8x8xf32> -> vector<8x8xf32>
    %cst_22 = arith.constant dense<0.000000e+00> : vector<8x8xf32>
    %45 = tpu.matmul %41, %44, %cst_22 {dimension_numbers = #tpu.dot_dimension_numbers<[1], [0], [0], [1], [0, 0, 1, 1], [], []>} : vector<8x8xf32>, vector<8x8xf32>, vector<8x8xf32> -> vector<8x8xf32>
    %46 = arith.addf %45, %40 : vector<8x8xf32>
    %cst_23 = arith.constant dense<0xFF800000> : vector<8xf32>
    %47 = vector.multi_reduction <maximumf>, %46, %cst_23 [1] : vector<8x8xf32> to vector<8xf32>
    %48 = vector.shape_cast %47 : vector<8xf32> to vector<8x1xf32>
    %49 = vector.broadcast %48 : vector<8x1xf32> to vector<8x8xf32>
    %50 = arith.subf %46, %49 : vector<8x8xf32>
    %51 = math.exp %50 : vector<8x8xf32>
    %cst_24 = arith.constant dense<0.000000e+00> : vector<8xf32>
    %52 = vector.multi_reduction <add>, %51, %cst_24 [1] : vector<8x8xf32> to vector<8xf32>
    %53 = vector.shape_cast %52 : vector<8xf32> to vector<8x1xf32>
    %cst_25 = arith.constant 1.000000e+00 : f32
    %54 = vector.broadcast %cst_25 : f32 to vector<8x1xf32>
    %55 = arith.divf %54, %53 : vector<8x1xf32>
    %56 = vector.broadcast %55 : vector<8x1xf32> to vector<8x8xf32>
    %57 = arith.mulf %51, %56 : vector<8x8xf32>
    %cst_26 = arith.constant dense<0.000000e+00> : vector<8x8xf32>
    %58 = tpu.matmul %57, %43, %cst_26 {dimension_numbers = #tpu.dot_dimension_numbers<[1], [0], [0], [1], [0, 0, 1, 1], [], []>} : vector<8x8xf32>, vector<8x8xf32>, vector<8x8xf32> -> vector<8x8xf32>
    %59 = vector.extract_strided_slice %30 {offsets = [0, 8], sizes = [8, 8], strides = [1, 1]} : vector<8x32xf32> to vector<8x8xf32>
    %60 = vector.extract_strided_slice %33 {offsets = [0, 8], sizes = [8, 8], strides = [1, 1]} : vector<8x32xf32> to vector<8x8xf32>
    %61 = vector.extract_strided_slice %23 {offsets = [0, 8], sizes = [8, 8], strides = [1, 1]} : vector<8x32xf32> to vector<8x8xf32>
    %62 = tpu.transpose %60, [1, 0] : vector<8x8xf32> -> vector<8x8xf32>
    %cst_27 = arith.constant dense<0.000000e+00> : vector<8x8xf32>
    %63 = tpu.matmul %59, %62, %cst_27 {dimension_numbers = #tpu.dot_dimension_numbers<[1], [0], [0], [1], [0, 0, 1, 1], [], []>} : vector<8x8xf32>, vector<8x8xf32>, vector<8x8xf32> -> vector<8x8xf32>
    %64 = arith.addf %63, %40 : vector<8x8xf32>
    %cst_28 = arith.constant dense<0xFF800000> : vector<8xf32>
    %65 = vector.multi_reduction <maximumf>, %64, %cst_28 [1] : vector<8x8xf32> to vector<8xf32>
    %66 = vector.shape_cast %65 : vector<8xf32> to vector<8x1xf32>
    %67 = vector.broadcast %66 : vector<8x1xf32> to vector<8x8xf32>
    %68 = arith.subf %64, %67 : vector<8x8xf32>
    %69 = math.exp %68 : vector<8x8xf32>
    %cst_29 = arith.constant dense<0.000000e+00> : vector<8xf32>
    %70 = vector.multi_reduction <add>, %69, %cst_29 [1] : vector<8x8xf32> to vector<8xf32>
    %71 = vector.shape_cast %70 : vector<8xf32> to vector<8x1xf32>
    %cst_30 = arith.constant 1.000000e+00 : f32
    %72 = vector.broadcast %cst_30 : f32 to vector<8x1xf32>
    %73 = arith.divf %72, %71 : vector<8x1xf32>
    %74 = vector.broadcast %73 : vector<8x1xf32> to vector<8x8xf32>
    %75 = arith.mulf %69, %74 : vector<8x8xf32>
    %cst_31 = arith.constant dense<0.000000e+00> : vector<8x8xf32>
    %76 = tpu.matmul %75, %61, %cst_31 {dimension_numbers = #tpu.dot_dimension_numbers<[1], [0], [0], [1], [0, 0, 1, 1], [], []>} : vector<8x8xf32>, vector<8x8xf32>, vector<8x8xf32> -> vector<8x8xf32>
    %77 = vector.extract_strided_slice %30 {offsets = [0, 16], sizes = [8, 8], strides = [1, 1]} : vector<8x32xf32> to vector<8x8xf32>
    %78 = vector.extract_strided_slice %33 {offsets = [0, 16], sizes = [8, 8], strides = [1, 1]} : vector<8x32xf32> to vector<8x8xf32>
    %79 = vector.extract_strided_slice %23 {offsets = [0, 16], sizes = [8, 8], strides = [1, 1]} : vector<8x32xf32> to vector<8x8xf32>
    %80 = tpu.transpose %78, [1, 0] : vector<8x8xf32> -> vector<8x8xf32>
    %cst_32 = arith.constant dense<0.000000e+00> : vector<8x8xf32>
    %81 = tpu.matmul %77, %80, %cst_32 {dimension_numbers = #tpu.dot_dimension_numbers<[1], [0], [0], [1], [0, 0, 1, 1], [], []>} : vector<8x8xf32>, vector<8x8xf32>, vector<8x8xf32> -> vector<8x8xf32>
    %82 = arith.addf %81, %40 : vector<8x8xf32>
    %cst_33 = arith.constant dense<0xFF800000> : vector<8xf32>
    %83 = vector.multi_reduction <maximumf>, %82, %cst_33 [1] : vector<8x8xf32> to vector<8xf32>
    %84 = vector.shape_cast %83 : vector<8xf32> to vector<8x1xf32>
    %85 = vector.broadcast %84 : vector<8x1xf32> to vector<8x8xf32>
    %86 = arith.subf %82, %85 : vector<8x8xf32>
    %87 = math.exp %86 : vector<8x8xf32>
    %cst_34 = arith.constant dense<0.000000e+00> : vector<8xf32>
    %88 = vector.multi_reduction <add>, %87, %cst_34 [1] : vector<8x8xf32> to vector<8xf32>
    %89 = vector.shape_cast %88 : vector<8xf32> to vector<8x1xf32>
    %cst_35 = arith.constant 1.000000e+00 : f32
    %90 = vector.broadcast %cst_35 : f32 to vector<8x1xf32>
    %91 = arith.divf %90, %89 : vector<8x1xf32>
    %92 = vector.broadcast %91 : vector<8x1xf32> to vector<8x8xf32>
    %93 = arith.mulf %87, %92 : vector<8x8xf32>
    %cst_36 = arith.constant dense<0.000000e+00> : vector<8x8xf32>
    %94 = tpu.matmul %93, %79, %cst_36 {dimension_numbers = #tpu.dot_dimension_numbers<[1], [0], [0], [1], [0, 0, 1, 1], [], []>} : vector<8x8xf32>, vector<8x8xf32>, vector<8x8xf32> -> vector<8x8xf32>
    %95 = vector.extract_strided_slice %30 {offsets = [0, 24], sizes = [8, 8], strides = [1, 1]} : vector<8x32xf32> to vector<8x8xf32>
    %96 = vector.extract_strided_slice %33 {offsets = [0, 24], sizes = [8, 8], strides = [1, 1]} : vector<8x32xf32> to vector<8x8xf32>
    %97 = vector.extract_strided_slice %23 {offsets = [0, 24], sizes = [8, 8], strides = [1, 1]} : vector<8x32xf32> to vector<8x8xf32>
    %98 = tpu.transpose %96, [1, 0] : vector<8x8xf32> -> vector<8x8xf32>
    %cst_37 = arith.constant dense<0.000000e+00> : vector<8x8xf32>
    %99 = tpu.matmul %95, %98, %cst_37 {dimension_numbers = #tpu.dot_dimension_numbers<[1], [0], [0], [1], [0, 0, 1, 1], [], []>} : vector<8x8xf32>, vector<8x8xf32>, vector<8x8xf32> -> vector<8x8xf32>
    %100 = arith.addf %99, %40 : vector<8x8xf32>
    %cst_38 = arith.constant dense<0xFF800000> : vector<8xf32>
    %101 = vector.multi_reduction <maximumf>, %100, %cst_38 [1] : vector<8x8xf32> to vector<8xf32>
    %102 = vector.shape_cast %101 : vector<8xf32> to vector<8x1xf32>
    %103 = vector.broadcast %102 : vector<8x1xf32> to vector<8x8xf32>
    %104 = arith.subf %100, %103 : vector<8x8xf32>
    %105 = math.exp %104 : vector<8x8xf32>
    %cst_39 = arith.constant dense<0.000000e+00> : vector<8xf32>
    %106 = vector.multi_reduction <add>, %105, %cst_39 [1] : vector<8x8xf32> to vector<8xf32>
    %107 = vector.shape_cast %106 : vector<8xf32> to vector<8x1xf32>
    %cst_40 = arith.constant 1.000000e+00 : f32
    %108 = vector.broadcast %cst_40 : f32 to vector<8x1xf32>
    %109 = arith.divf %108, %107 : vector<8x1xf32>
    %110 = vector.broadcast %109 : vector<8x1xf32> to vector<8x8xf32>
    %111 = arith.mulf %105, %110 : vector<8x8xf32>
    %cst_41 = arith.constant dense<0.000000e+00> : vector<8x8xf32>
    %112 = tpu.matmul %111, %97, %cst_41 {dimension_numbers = #tpu.dot_dimension_numbers<[1], [0], [0], [1], [0, 0, 1, 1], [], []>} : vector<8x8xf32>, vector<8x8xf32>, vector<8x8xf32> -> vector<8x8xf32>
    %113 = tpu.concatenate %58, %76, %94, %112 in 1 : vector<8x8xf32>, vector<8x8xf32>, vector<8x8xf32>, vector<8x8xf32> -> vector<8x32xf32>
    %c0_42 = arith.constant 0 : index
    %c0_43 = arith.constant 0 : index
    %114 = vector.load %arg4[%c0_42, %c0_43] : memref<32x32xf32, #tpu.memory_space<vmem>>, vector<32x32xf32>
    %cst_44 = arith.constant dense<0.000000e+00> : vector<8x32xf32>
    %115 = tpu.matmul %113, %114, %cst_44 {dimension_numbers = #tpu.dot_dimension_numbers<[1], [0], [0], [1], [0, 0, 1, 1], [], []>} : vector<8x32xf32>, vector<32x32xf32>, vector<8x32xf32> -> vector<8x32xf32>
    %116 = arith.addf %1, %115 : vector<8x32xf32>
    %c0_45 = arith.constant 0 : index
    %c0_46 = arith.constant 0 : index
    %117 = vector.load %arg8[%c0_45, %c0_46] : memref<1x32xf32, #tpu.memory_space<vmem>>, vector<1x32xf32>
    %118 = vector.shape_cast %117 : vector<1x32xf32> to vector<32xf32>
    %119 = arith.mulf %116, %116 : vector<8x32xf32>
    %cst_47 = arith.constant dense<0.000000e+00> : vector<8xf32>
    %120 = vector.multi_reduction <add>, %119, %cst_47 [1] : vector<8x32xf32> to vector<8xf32>
    %121 = vector.shape_cast %120 : vector<8xf32> to vector<8x1xf32>
    %122 = math.sqrt %121 : vector<8x1xf32>
    %cst_48 = arith.constant 0.176776692 : f32
    %123 = vector.broadcast %cst_48 : f32 to vector<8x1xf32>
    %124 = arith.mulf %122, %123 : vector<8x1xf32>
    %125 = vector.shape_cast %118 : vector<32xf32> to vector<1x32xf32>
    %126 = vector.broadcast %125 : vector<1x32xf32> to vector<8x32xf32>
    %127 = arith.mulf %126, %116 : vector<8x32xf32>
    %cst_49 = arith.constant 9.99999993E-9 : f32
    %128 = vector.broadcast %cst_49 : f32 to vector<8x1xf32>
    %129 = arith.addf %124, %128 : vector<8x1xf32>
    %cst_50 = arith.constant 1.000000e+00 : f32
    %130 = vector.broadcast %cst_50 : f32 to vector<8x1xf32>
    %131 = arith.divf %130, %129 : vector<8x1xf32>
    %132 = vector.broadcast %131 : vector<8x1xf32> to vector<8x32xf32>
    %133 = arith.mulf %127, %132 : vector<8x32xf32>
    %c0_51 = arith.constant 0 : index
    %c0_52 = arith.constant 0 : index
    %134 = vector.load %arg9[%c0_51, %c0_52] : memref<32x64xf32, #tpu.memory_space<vmem>>, vector<32x64xf32>
    %cst_53 = arith.constant dense<0.000000e+00> : vector<8x64xf32>
    %135 = tpu.matmul %133, %134, %cst_53 {dimension_numbers = #tpu.dot_dimension_numbers<[1], [0], [0], [1], [0, 0, 1, 1], [], []>} : vector<8x32xf32>, vector<32x64xf32>, vector<8x64xf32> -> vector<8x64xf32>
    %c0_54 = arith.constant 0 : index
    %c0_55 = arith.constant 0 : index
    %136 = vector.load %arg10[%c0_54, %c0_55] : memref<32x64xf32, #tpu.memory_space<vmem>>, vector<32x64xf32>
    %cst_56 = arith.constant dense<0.000000e+00> : vector<8x64xf32>
    %137 = tpu.matmul %133, %136, %cst_56 {dimension_numbers = #tpu.dot_dimension_numbers<[1], [0], [0], [1], [0, 0, 1, 1], [], []>} : vector<8x32xf32>, vector<32x64xf32>, vector<8x64xf32> -> vector<8x64xf32>
    %138 = arith.negf %137 : vector<8x64xf32>
    %139 = math.exp %138 : vector<8x64xf32>
    %cst_57 = arith.constant 1.000000e+00 : f32
    %140 = vector.broadcast %cst_57 : f32 to vector<8x64xf32>
    %141 = arith.addf %140, %139 : vector<8x64xf32>
    %142 = arith.divf %140, %141 : vector<8x64xf32>
    %143 = arith.mulf %137, %142 : vector<8x64xf32>
    %144 = arith.mulf %135, %143 : vector<8x64xf32>
    %c0_58 = arith.constant 0 : index
    %c0_59 = arith.constant 0 : index
    %145 = vector.load %arg11[%c0_58, %c0_59] : memref<64x32xf32, #tpu.memory_space<vmem>>, vector<64x32xf32>
    %cst_60 = arith.constant dense<0.000000e+00> : vector<8x32xf32>
    %146 = tpu.matmul %144, %145, %cst_60 {dimension_numbers = #tpu.dot_dimension_numbers<[1], [0], [0], [1], [0, 0, 1, 1], [], []>} : vector<8x64xf32>, vector<64x32xf32>, vector<8x32xf32> -> vector<8x32xf32>
    %147 = arith.addf %116, %146 : vector<8x32xf32>
    %c0_61 = arith.constant 0 : index
    %c0_62 = arith.constant 0 : index
    %c0_63 = arith.constant 0 : index
    %148 = vector.load %arg12[%c0_61, %c0_62, %c0_63] : memref<1x8x32xf32, #tpu.memory_space<vmem>>, vector<1x8x32xf32>
    %149 = vector.shape_cast %148 : vector<1x8x32xf32> to vector<8x32xf32>
    %150 = vector.shape_cast %147 : vector<8x32xf32> to vector<1x8x32xf32>
    tpu.vector_store %arg12[%c0_61, %c0_62, %c0_63], %150 {strides = array<i32>} : memref<1x8x32xf32, #tpu.memory_space<vmem>>, vector<1x8x32xf32>,
    return
  }
  func.func @transform_0(%arg0: i32) -> (i32, i32, i32) {
    %c0_i32 = arith.constant 0 : i32
    %c0_i32_0 = arith.constant 0 : i32
    %c0_i32_1 = arith.constant 0 : i32
    return %arg0, %c0_i32, %c0_i32_0 : i32, i32, i32
  }
  func.func @transform_1(%arg0: i32) -> (i32, i32) {
    %c0_i32 = arith.constant 0 : i32
    %c0_i32_0 = arith.constant 0 : i32
    %c0_i32_1 = arith.constant 0 : i32
    return %c0_i32, %c0_i32_0 : i32, i32
  }
  func.func @transform_2(%arg0: i32) -> (i32, i32) {
    %c0_i32 = arith.constant 0 : i32
    %c0_i32_0 = arith.constant 0 : i32
    %c0_i32_1 = arith.constant 0 : i32
    return %c0_i32, %c0_i32_0 : i32, i32
  }
  func.func @transform_3(%arg0: i32) -> (i32, i32) {
    %c0_i32 = arith.constant 0 : i32
    %c0_i32_0 = arith.constant 0 : i32
    %c0_i32_1 = arith.constant 0 : i32
    return %c0_i32, %c0_i32_0 : i32, i32
  }
  func.func @transform_4(%arg0: i32) -> (i32, i32) {
    %c0_i32 = arith.constant 0 : i32
    %c0_i32_0 = arith.constant 0 : i32
    %c0_i32_1 = arith.constant 0 : i32
    return %c0_i32, %c0_i32_0 : i32, i32
  }
  func.func @transform_5(%arg0: i32) -> (i32, i32) {
    %c0_i32 = arith.constant 0 : i32
    %c0_i32_0 = arith.constant 0 : i32
    %c0_i32_1 = arith.constant 0 : i32
    return %c0_i32, %c0_i32_0 : i32, i32
  }
  func.func @transform_6(%arg0: i32) -> (i32, i32) {
    %c0_i32 = arith.constant 0 : i32
    %c0_i32_0 = arith.constant 0 : i32
    %c0_i32_1 = arith.constant 0 : i32
    return %c0_i32, %c0_i32_0 : i32, i32
  }
  func.func @transform_7(%arg0: i32) -> (i32, i32) {
    %c0_i32 = arith.constant 0 : i32
    %c0_i32_0 = arith.constant 0 : i32
    %c0_i32_1 = arith.constant 0 : i32
    return %c0_i32, %c0_i32_0 : i32, i32
  }
  func.func @transform_8(%arg0: i32) -> (i32, i32) {
    %c0_i32 = arith.constant 0 : i32
    %c0_i32_0 = arith.constant 0 : i32
    %c0_i32_1 = arith.constant 0 : i32
    return %c0_i32, %c0_i32_0 : i32, i32
  }
  func.func @transform_9(%arg0: i32) -> (i32, i32) {
    %c0_i32 = arith.constant 0 : i32
    %c0_i32_0 = arith.constant 0 : i32
    %c0_i32_1 = arith.constant 0 : i32
    return %c0_i32, %c0_i32_0 : i32, i32
  }
  func.func @transform_10(%arg0: i32) -> (i32, i32) {
    %c0_i32 = arith.constant 0 : i32
    %c0_i32_0 = arith.constant 0 : i32
    %c0_i32_1 = arith.constant 0 : i32
    return %c0_i32, %c0_i32_0 : i32, i32
  }
  func.func @transform_11(%arg0: i32) -> (i32, i32, i32) {
    %c0_i32 = arith.constant 0 : i32
    %c0_i32_0 = arith.constant 0 : i32
    %c0_i32_1 = arith.constant 0 : i32
    return %arg0, %c0_i32, %c0_i32_0 : i32, i32, i32
  }
  func.func @transform_12(%arg0: i32) -> (i32, i32, i32) {
    %c0_i32 = arith.constant 0 : i32
    %c0_i32_0 = arith.constant 0 : i32
    %c0_i32_1 = arith.constant 0 : i32
    return %arg0, %c0_i32, %c0_i32_0 : i32, i32, i32
  }
  func.func @transform_13(%arg0: i32) -> (i32, i32, i32) {
    %c0_i32 = arith.constant 0 : i32
    %c0_i32_0 = arith.constant 0 : i32
    %c0_i32_1 = arith.constant 0 : i32
    return %arg0, %c0_i32, %c0_i32_0 : i32, i32, i32
  }
}

</mosaic_0001>

<bundles_post_ra>
// kernel: tpu_custom_call.1
= control target key start
LH: loop header
LB: loop body
LE: loop exit
PB: predicated region body
PF: predicated region fallthrough
CT: control target
= control target key end

     0   :  { %s3040_s0 = inlined_call_operand.hbm [shape: f32[2,8,32], index: 0, kind: input, shape index: {}]   ;;  %s3041_s1 = inlined_call_operand.vmem [shape: f32[1,32], index: 1, kind: input, shape index: {}]   ;;  %s3042_s2 = inlined_call_operand.vmem [shape: f32[32,160], index: 2, kind: input, shape index: {}]   ;;  %s3043_s3 = inlined_call_operand.vmem [shape: f32[32,32], index: 3, kind: input, shape index: {}]   ;;  %s3044_s4 = inlined_call_operand.hbm [shape: f32[8,32], index: 4, kind: input, shape index: {}]   ;;  %s3045_s5 = inlined_call_operand.vmem [shape: f32[8,32], index: 5, kind: input, shape index: {}]   ;;  %s3046_s6 = inlined_call_operand.hbm [shape: f32[8,8], index: 6, kind: input, shape index: {}]   ;;  %s3047_s7 = inlined_call_operand.vmem [shape: f32[1,32], index: 7, kind: input, shape index: {}]   ;;  %s3048_s8 = inlined_call_operand.hbm [shape: f32[32,64], index: 8, kind: input, shape index: {}]   ;;  %s3049_s9 = inlined_call_operand.hbm [shape: f32[32,64], index: 9, kind: input, shape index: {}]   ;;  %s3050_s10 = inlined_call_operand.vmem [shape: f32[64,32], index: 10, kind: input, shape index: {}]   ;;  %s3051_s11 = inlined_call_operand.hbm [shape: f32[2,8,32], index: 11, kind: output, shape index: {0}]   ;;  %s3052_s12 = inlined_call_operand.hbm [shape: f32[2,8,32], index: 12, kind: output, shape index: {1}]   ;;  %s3053_s13 = inlined_call_operand.hbm [shape: f32[2,8,32], index: 13, kind: output, shape index: {2}]  }
   0x1   :  { %3064 = sst [smem:[#allocation24_spill]] %s3044_s4 }
   0x2   :  { %3065 = sst [smem:[#allocation25_spill]] %s3046_s6 }
   0x3   :  { %3066 = sst [smem:[#allocation26_spill]] %s3048_s8 }
   0x4   :  { %3067 = sst [smem:[#allocation27_spill]] %s3049_s9 }
   0x5   :  { %19 = vsyncpa [#allocation3], 0 }
   0x6   :  { %21 = vsyncpa [#allocation3 + $0x1], 0 }
   0x7   :  { %22 = vsyncpa [#allocation6], 0 }
   0x8   :  { %23 = vsyncpa [#allocation9], 0 }
   0x9   :  { %24 = vsyncpa [#allocation4], 0 }
   0xa   :  { %26 = vsyncpa [#allocation4 + $0x1], 0 }
   0xb   :  { %27 = vsyncpa [#allocation13], 0 }
   0xc   :  { %29 = vsyncpa [#allocation13 + $0x1], 0  ;;  %s2592_s25 = smov 0   ;;  %s2594_s26 = smov 0  }
   0xd   :  { %s2596_s27 = smov 0   ;;  %s2598_s28 = smov 0  }
   0xe LB: > { %3068 = sst [smem:[#allocation20_spill]] %s2489_s27  ;;  %s2495_s29 = smov [#allocation5]   ;;  %s2493_s28 = sphi %s2598_s28, %s3094_s28   ;;  %s2489_s27 = sphi %s2596_s27, %s3096_s27   ;;  %s2485_s26 = sphi %s2594_s26, %s3098_s26   ;;  %s2481_s25 = sphi %s2592_s25, %s3097_s25  }
   0xf   : > { %3069 = sst [smem:[#allocation21_spill]] %s2493_s28  ;;  %s376_s30 = sshll.u32 %s2495_s29, 4  ;;  %s377_s30 = int_to_ptr.vmem [resolvable:$true] %s376_s30 }
  0x10   : > { %s2613_s14 = sadd.s32 4294967295, %s2493_s28   ;;  %p1912_p0 = scmp.ge.s32.totalorder %s2493_s28, 1 }
  0x11   : > { %p3056_p1 = scmp.eq.s32.totalorder %s2613_s14, 0  ;;  %p354_p2 = scmp.lt.s32.totalorder %s2493_s28, 3 }
  0x12   : > { %s2496_s16 = smov [#allocation8]   ;;  %s2497_s19 = smov [#allocation7]  }
  0x13   : > { %p2618_p3 = pnand %p1912_p0, %p354_p2  ;;  %s403_s17 = sshll.u32 %s2496_s16, 4  ;;  %s2625_s17 = int_to_ptr.vmem [resolvable:$true] %s403_s17 }
  0x14   : > { %s390_s20 = sshll.u32 %s2497_s19, 4  ;;  %s2244_s21 = scalar_lea.vmem %s377_s30, 128  ;;  %s2633_s20 = int_to_ptr.vmem [resolvable:$true] %s390_s20 }
  0x15   : > { %s3070_s15 = scalar_select %p2618_p3, 1, 0 }
  0x16   : > { %p2113_p5 = pneg %p2618_p3  ;;  %p2245_p8 = scmp.ne.s32.totalorder %s377_s30, %s2244_s21 }
  0x17   : > { %p2252_p11 = scmp.lt.s32.totalorder %s377_s30, %s377_s30  ;;  %p2253_p12 = scmp.lt.s32.totalorder %s2244_s21, %s2244_s21 }
  0x18   : > { %p2629_p6 = pnand %p2113_p5, %p3056_p1 }
  0x19   : > { %p2254_p13 = por %p2253_p12, %p2252_p11 }
  0x1a   : > { %p2235_p7 = pneg %p2629_p6 }
  0x1c   : > { %p2247_p9 = pnand %p2245_p8, %p2235_p7 }
  0x1e   : > { %p2248_p10 = pneg %p2247_p9 }
  0x20   : > { %p2255_p0 = pnand %p2254_p13, %p2248_p10 }
  0x22   : > { %2258 = shalt.err (!%p2255_p0)
}
  0x23   : > { %s3072_s4 = sld [smem:[#allocation24_spill]]  ;;  %s2270_s24 = scalar_lea.vmem %s2625_s17, 512 }
  0x24   : > { %p2271_p2 = scmp.ne.s32.totalorder %s2625_s17, %s2270_s24  ;;  %p2278_p9 = scmp.lt.s32.totalorder %s2625_s17, %s2625_s17 }
  0x25   : > { %p2279_p10 = scmp.lt.s32.totalorder %s2270_s24, %s2270_s24 }
  0x26   : > { %p2273_p5 = pnand %p2271_p2, %p2235_p7 }
  0x27   : > { %p2280_p11 = por %p2279_p10, %p2278_p9 }
  0x28   : > { %p2274_p8 = pneg %p2273_p5 }
  0x29   : > { %2116 = dma.hbm_to_vmem [thread:$0]  (!%p2629_p6), %s3072_s4, 128, %s377_s30, [#allocation6]  }
  0x2a   : > { %p2281_p12 = pnand %p2280_p11, %p2274_p8 }
  0x2c   : > { %2284 = shalt.err (!%p2281_p12)
}
  0x2d   : > { %s2498_s29 = smov 128   ;;  %s2499_s30 = smov 8  }
  0x2e   : > { %s3073_s8 = sld [smem:[#allocation26_spill]]  ;;  %s2296_s21 = scalar_lea.vmem %s2633_s20, 128 }
  0x2f   : > { %p2297_p13 = scmp.ne.s32.totalorder %s2633_s20, %s2296_s21  ;;  %p2304_p5 = scmp.lt.s32.totalorder %s2633_s20, %s2633_s20 }
  0x30   : > { %p2305_p8 = scmp.lt.s32.totalorder %s2296_s21, %s2296_s21 }
  0x31   : > { %p2299_p0 = pnand %p2297_p13, %p2235_p7 }
  0x32   : > { %p2306_p9 = por %p2305_p8, %p2304_p5 }
  0x33   : > { %p2300_p2 = pneg %p2299_p0 }
  0x34   : > { %2122 = dma.hbm_to_vmem [thread:$0]  (!%p2629_p6), %s3073_s8, 512, %s2625_s17, [#allocation9], %s2498_s29, %s2498_s29, %s2499_s30  }
  0x35   : > { %p2307_p10 = pnand %p2306_p9, %p2300_p2 }
  0x37   : > { %2310 = shalt.err (!%p2307_p10)
}
  0x38   : > { %s3074_s6 = sld [smem:[#allocation25_spill]]  ;;  %s2500_s17 = smov [#allocation10]  }
  0x39   : > { %s416_s24 = sshll.u32 %s2500_s17, 4  ;;  %s417_s24 = int_to_ptr.vmem [resolvable:$true] %s416_s24 }
  0x3a   : > { %s2322_s16 = scalar_lea.vmem %s417_s24, 512  ;;  %p2330_p0 = scmp.lt.s32.totalorder %s417_s24, %s417_s24 }
  0x3b   : > { %p2323_p11 = scmp.ne.s32.totalorder %s417_s24, %s2322_s16  ;;  %p2331_p2 = scmp.lt.s32.totalorder %s2322_s16, %s2322_s16 }
  0x3d   : > { %p2325_p12 = pnand %p2323_p11, %p2235_p7  ;;  %p2332_p5 = por %p2331_p2, %p2330_p0 }
  0x3e   : > { %2119 = dma.hbm_to_vmem [thread:$0]  (!%p2629_p6), %s3074_s6, 128, %s2633_s20, [#allocation6]  }
  0x3f   : > { %p2326_p13 = pneg %p2325_p12 }
  0x41   : > { %p2333_p8 = pnand %p2332_p5, %p2326_p13 }
  0x43   : > { %2336 = shalt.err (!%p2333_p8)
}
  0x44   : > { %s3075_s9 = sld [smem:[#allocation27_spill]]  ;;  %s3054_s18 = sadd.s32 4294967294, %s2493_s28  }
  0x45   : > { %s2681_s20 = sadd.s32 1, %s2493_s28   ;;  %s42_s23 = sadd.s32 1, %s2489_s27 }
  0x46   : > { %3076 = sst [smem:[#allocation22_spill]] %s2681_s20  ;;  %s39_s22 = ssub.s32 %s2493_s28, %s2681_s20 }
  0x47   : > { %p40_p7 = scmp.eq.s32.totalorder %s39_s22, 0  ;;  %p49_p9 = scmp.ne.s32.totalorder %s2489_s27, %s2485_s26 }
  0x48   : > { %p50_p10 = scmp.eq.s32.totalorder %s2493_s28, 0  ;;  %p55_p11 = scmp.ne.s32.totalorder %s2485_s26, %s2481_s25 }
  0x49   : > { %s2692_s17 = scalar_select %p40_p7, %s2489_s27, %s42_s23  }
  0x4a   : > { %2125 = dma.hbm_to_vmem [thread:$0]  (!%p2629_p6), %s3075_s9, 512, %s417_s24, [#allocation9], %s2498_s29, %s2498_s29, %s2499_s30  }
  0x4b   : > { %3077 = sst [smem:[#allocation23_spill]] %s2692_s17  ;;  %p2694_p12 = por %p50_p10, %p49_p9 }
  0x4c   : > { %p2700_p6 = por %p3056_p1, %p55_p11  ;;  %p289_p13 = scmp.eq.s32.totalorder %s2613_s14, 1 }
  0x4d   : > { %p295_p0 = scmp.eq.s32.totalorder %s3054_s18, 1  ;;  %p2144_p2 = scmp.lt.s32.totalorder %s2493_s28, 2 }
  0x4e   : > { %s3079_s29 = scalar_select %p2700_p6, 1, 0 }
  0x4f   : > { %s433_s30 = sand.u32 1, %s2489_s27   ;;  %p2709_p5 = por %p289_p13, %p49_p9 }
  0x50   : > { %p2713_p8 = por %p295_p0, %p55_p11  ;;  %s1918_s21 = sshll.u32 %s433_s30, 3 }
  0x51   : > { %s3080_s24 = scalar_select %p2709_p5, 1, 0 }
  0x52   : > { %s3081_s19 = scalar_select %p2713_p8, 1, 0 }
  0x53   : > { %s1919_s22 = sshll.u32 %s2493_s28, 7  ;;  %s437_s18 = scalar_lea.vmem [#allocation2], %s1918_s21 }
  0x54   : > { %s2721_s6 = scalar_lea.hbm %s3040_s0, %s1919_s22  ;;  %s444_s8 = sshll.u32 %s437_s18, 4  ;;  %s445_s8 = int_to_ptr.vmem [resolvable:$true] %s444_s8 }
  0x55   : > { %p2725_p7 = pnand %p2144_p2, %p2694_p12  ;;  %s434_s17 = scalar_lea.sflag [#allocation3], %s433_s30 }
  0x56   : > { %s2337_s27 = scalar_lea.hbm %s2721_s6, 128  ;;  %s2342_s23 = scalar_lea.hbm %s3040_s0, 256 }
  0x57   : > { %p2338_p9 = scmp.ne.s32.totalorder %s2721_s6, %s2337_s27  ;;  %p2339_p10 = pneg %p2725_p7 }
  0x58   : > { %p2343_p0 = scmp.lt.s32.totalorder %s2721_s6, %s3040_s0  ;;  %p2344_p12 = scmp.lt.s32.totalorder %s2342_s23, %s2337_s27 }
  0x59   : > { %p2340_p11 = pnand %p2339_p10, %p2338_p9 }
  0x5a   : > { %p2345_p2 = por %p2344_p12, %p2343_p0 }
  0x5b   : > { %p2341_p13 = pneg %p2340_p11 }
  0x5d   : > { %p2346_p4 = pnand %p2345_p2, %p2341_p13 }
  0x5f   : > { %2349 = shalt.err (!%p2346_p4)
}
  0x60   : > { %s2350_s16 = scalar_lea.vmem %s445_s8, 128  ;;  %s2501_s30 = smov [#allocation2]  }
  0x61   : > { %p2351_p1 = scmp.ne.s32.totalorder %s445_s8, %s2350_s16  ;;  %s2355_s20 = sshll.u32 %s2501_s30, 4  ;;  %s2356_s20 = int_to_ptr.vmem [resolvable:$false] %s2355_s20 }
  0x62   : > { %s2357_s28 = scalar_lea.vmem %s2356_s20, 256  ;;  %p2358_p9 = scmp.lt.s32.totalorder %s445_s8, %s2356_s20 }
  0x63   : > { %p2353_p8 = pnand %p2351_p1, %p2339_p10  ;;  %p2359_p11 = scmp.lt.s32.totalorder %s2357_s28, %s2350_s16 }
  0x65   : > { %p2354_p5 = pneg %p2353_p8  ;;  %p2360_p6 = por %p2359_p11, %p2358_p9 }
  0x67   : > { %p2361_p3 = pnand %p2360_p6, %p2354_p5 }
  0x69   : > { %2364 = shalt.err (!%p2361_p3)
}
  0x6a   : > { %2129 = dma.hbm_to_vmem [thread:$0]  (!%p2725_p7), %s2721_s6, 128, %s445_s8, %s434_s17  }
  0x6b   : > { %p3083_p13 = scmp.ne.s32.totalorder %s3070_s15, 0 }
  0x6c   : > { %s2746_s27 = sand.u32 (!%p3083_p13), 1, %s2485_s26   ;;  %p3084_p1 = scmp.ne.s32.totalorder (!%p3083_p13), %s3079_s29, 0 }
  0x6d   : > { %453 = sbr.rel (%p3083_p13) target bundleno = 2425 (0x979), region = 64  ;;  %s2749_s4 = sshll.u32 (!%p3083_p13), %s2746_s27, 3 }
  0x6e   : > { %s456_s28 = scalar_lea.sflag (!%p3083_p13), [#allocation3], %s2746_s27  ;;  %s459_s20 = scalar_lea.vmem (!%p3083_p13), [#allocation2], %s2749_s4 }
  0x72   : > { %2460 = dma.done.wait (%p3084_p1), %s456_s28, 128  }
  0x73   : > { %2462 = vsyncadd (%p3084_p1), %s456_s28, 4294967168  ;;  %p3085_p3 = scmp.eq.s32.totalorder %s2613_s14, 0 }
  0x75   : > { %2464 = dma.done.wait (%p3085_p3), [#allocation6], 256   ;;  %p3086_p4 = pmov %p3085_p3 }
  0x76   : > { %p3087_p6 = pmov %p3085_p3 }
  0x77   : > { %2466 = vsyncadd (%p3086_p4), [#allocation6], 4294967040 }
  0x78   : > { %2468 = dma.done.wait (%p3087_p6), [#allocation9], 1024   ;;  %p3088_p5 = pmov %p3085_p3 }
  0x79   : > { %v2765_v0 = vld [vmem:[%s459_s20] sm:$0xff]  ;;  %vm531_vm0 = vcmask 261120   ;;  %v561_v3 = vld [vmem:[%s3042_s2 + $0x38] sm:$0xff]  ;;  %v560_v4 = vld [vmem:[%s3042_s2 + $0x30] sm:$0xff]  ;;  %v2502_v7 = vmov 0.0   ;;  %s2503_s17 = smov 32  }
  0x7a   : > { %2470 = vsyncadd (%p3088_p5), [#allocation9], 4294966272  ;;  %v530_v1 = vmul.f32 %v2765_v0, %v2765_v0  ;;  %v559_v5 = vld [vmem:[%s3042_s2 + $0x28] sm:$0xff]  ;;  %589 = vmatprep.subr.mxu0 %v561_v3  ;;  %v558_v6 = vld [vmem:[%s3042_s2 + $0x20] sm:$0xff]  ;;  %629 = vmatprep.mubr.f32.mxu0 %v2502_v7  ;;  %s2504_s29 = smov 96   ;;  %vm2505_vm3 = vmmov 0  }
  0x7b   : > { %590 = vmatpush1.msra.mxu0 %v560_v4  ;;  %v557_v8 = vld [vmem:[%s3042_s2 + $0x18] sm:$0xff]  ;;  %2002 = vmatprep.subr.mxu1 %v2502_v7  ;;  %v556_v9 = vld [vmem:[%s3042_s2 + $0x10] sm:$0xff]  ;;  %v555_v10 = vld [vmem:[%s3042_s2 + $0x8] sm:$0xff]  ;;  %s2506_s21 = smov 112   ;;  %s2507_s18 = smov 120   ;;  %vm671_vm4 = vcmask 64512  }
  0x7c   : > { %v532_v2 = vsel %vm531_vm0, %v530_v1, 0.0  ;;  %591 = vmatprep.subr.mxu0 %v559_v5  ;;  %v554_v11 = vld [vmem:[%s3042_s2] sm:$0xff]  ;;  %v636_v12 = vld [vmem:[#allocation5] sm:$0xff]  ;;  %2004 = vmatprep.mubr.msk.f32.mxu1 %vm2505_vm3, %v2502_v7  ;;  %s2508_s16 = smov 104   ;;  %s2509_s30 = smov 88   ;;  %v670_v45 = vld [vmem:[#allocation7] sm:$0xff] }
  0x7d   : > { %533 = vadd.xlane.f32.xlu0 %v532_v2  ;;  %592 = vmatpush1.msra.mxu0 %v558_v6  ;;  %v637_v13 = vld [vmem:[%s3045_s5] sm:$0xff]  ;;  %s2510_s28 = smov 80   ;;  %s2511_s20 = smov 72   ;;  %vm1343_vm5 = vcmask 130048   ;;  %vm1345_vm6 = vcmask 195584   ;;  %vm1616_vm9 = vcmask 523264  }
  0x7e   : > { %593 = vmatprep.subr.mxu0 %v557_v8  ;;  %650 = vrot.lane.b32.xlu1 %v636_v12, %s2503_s17  ;;  %v1929_v22 = vld [vmem:[%s3041_s1] ss:$0 sm:$0xff]  ;;  %s520_s6 = scalar_lea.vmem [#allocation12], %s2749_s4  ;;  %s2512_s8 = smov 56  }
  0x7f   : > { %594 = vmatpush1.msra.mxu0 %v556_v9  ;;  %v549_v23 = vmul.f32 %v1929_v22, %v2765_v0  ;;  %s2513_s9 = smov 64   ;;  %s2514_s15 = smov 48  }
  0x80   : > { %595 = vmatprep.subr.mxu0 %v555_v10  ;;  %p3089_p7 = scmp.ne.s32.totalorder %s3080_s24, 0 }
  0x81   : > { %596 = vmatpush1.msra.mxu0 %v554_v11 }
  0x82   : > { %1997 = vmatprep.subr.mxu0 %v2502_v7 }
  0x93   : > { %640 = vrot.lane.b32.xlu0 %v637_v13, %s2504_s29 }
  0xf0   : > { %v651_v31 = vpop.permute.xlu1 %650 }
 0x106   : > { %v534_v14 = vpop.xlane.xlu0 %533 }
 0x107   : > { %2205 = vrsqrt.f32 %v534_v14  ;;  %vm537_vm1 = vcmp.eq.f32.partialorder %v534_v14, inf  ;;  %v540_v17 = vand.u32 2147483648, %v534_v14  ;;  %vm539_vm2 = vcmp.eq.f32.partialorder %v534_v14, 0.0 }
 0x10a   : > { %v641_v29 = vpop.permute.xlu0 %640 }
 0x114   : > { %v2206_v15 = vpop.eup %2205 }
 0x115   : > { %v536_v16 = vmul.f32 %v2206_v15, %v534_v14 }
 0x117   : > { %v538_v18 = vsel %vm537_vm1, %v534_v14, %v536_v16 }
 0x118   : > { %v541_v19 = vsel %vm539_vm2, %v540_v17, %v538_v18 }
 0x119   : > { %v542_v20 = vmul.f32 0.17677669, %v541_v19 }
 0x11b   : > { %v550_v21 = vadd.f32 1e-08, %v542_v20 }
 0x11d   : > { %2207 = vrcp.f32 %v550_v21 }
 0x12a   : > { %v2208_v24 = vpop.eup %2207 }
 0x12b   : > { %v553_v25 = vmul.f32 %v2208_v24, %v549_v23 }
 0x12d   : > { %1930 = vmatmul.mubr.msk.f32.vlgmr.msra.gmra.mxu0 %vm531_vm0, %v553_v25 }
 0x12e   : > { %1999 = vmatprep.mubr.msk.f32.mxu0 %vm2505_vm3, %v2502_v7 }
 0x1ed   : > { %v2806_v26 = vpop.f32.mrf.mxu0 }
 0x1ee   : > { %v643_v30 = vmul.f32 %v641_v29, %v2806_v26  ;;  %v638_v33 = vmul.f32 %v636_v12, %v2806_v26  ;;  %v653_v36 = vmul.f32 %v651_v31, %v2806_v26 }
 0x1ef   : > { %v633_v27 = vpop.f32.mrf.mxu0 }
 0x1f0   : > { %v654_v28 = vmul.f32 %v637_v13, %v633_v27 }
 0x1f2   : > { %656 = vrot.lane.b32.xlu1 %v654_v28, %s2503_s17 }
 0x1f6   : > { %645 = vrot.lane.b32.xlu1 %v643_v30, %s2503_s17  ;;  %s2515_s17 = smov 40  }
 0x264   : > { %v657_v32 = vpop.permute.xlu1 %656 }
 0x265   : > { %v659_v37 = vadd.f32 %v657_v32, %v653_v36  ;;  %v1350_v36 = vld [vmem:[%s3043_s3 + $0x18] sm:$0xff] }
 0x268   : > { %v646_v34 = vpop.permute.xlu1 %645 }
 0x269   : > { %v648_v35 = vadd.f32 %v646_v34, %v638_v33 }
 0x26b   : > { %998 = vrot.lane.b32.xlu0 %v648_v35, %s2506_s21  ;;  %832 = vrot.lane.b32.xlu1 %v648_v35, %s2507_s18  ;;  %s2516_s21 = smov 8  }
 0x26f   : > { %1164 = vrot.lane.b32.xlu0 %v648_v35, %s2508_s16  ;;  %661 = vrot.lane.b32.xlu1 %v659_v37, %s2504_s29  ;;  %s527_s29 = scalar_lea.vmem [#allocation14], %s2749_s4 }
 0x273   : > { %834 = vrot.lane.b32.xlu1 %v659_v37, %s2509_s30  ;;  %s1697_s30 = sand.u32 1, %s2613_s14  }
 0x274   : > { %s2958_s22 = scalar_lea.sflag [#allocation13], %s1697_s30 }
 0x277   : > { %1000 = vrot.lane.b32.xlu1 %v659_v37, %s2510_s28  ;;  %s2946_s28 = sshll.u32 %s2613_s14, 7  ;;  %s2519_s14 = smov [#allocation12]  }
 0x27b   : > { %1166 = vrot.lane.b32.xlu1 %v659_v37, %s2511_s20 }
 0x2dd   : > { %v833_v38 = vpop.permute.xlu1 %832  ;;  %v999_v42 = vpop.permute.xlu0 %998 }
 0x2e1   : > { %v662_v39 = vpop.permute.xlu1 %661  ;;  %v1165_v44 = vpop.permute.xlu0 %1164 }
 0x2e2   : > { %664 = vst.msk [vmem:[%s520_s6] sm:$0xff] %vm531_vm0, %v662_v39  ;;  %1998 = vmatpush3.xpose.msk.msra.mxu0 %vm671_vm4, %v662_v39 }
 0x2e3   : > { %2007 = vmatprep.subr.mxu0 %v2502_v7 }
 0x2e5   : > { %2000 = vmatmul.mubr.msk.f32.vlgmr.msra.gmra.mxu0 %vm671_vm4, %v648_v35  ;;  %v835_v40 = vpop.permute.xlu1 %834 }
 0x2e6   : > { %2008 = vmatpush3.xpose.msk.msra.mxu0 %vm671_vm4, %v835_v40  ;;  %2009 = vmatprep.mubr.msk.f32.mxu0 %vm2505_vm3, %v2502_v7 }
 0x2e7   : > { %2017 = vmatprep.subr.mxu0 %v2502_v7 }
 0x2e9   : > { %2010 = vmatmul.mubr.msk.f32.vlgmr.msra.gmra.mxu0 %vm671_vm4, %v833_v38  ;;  %v1001_v41 = vpop.permute.xlu1 %1000 }
 0x2ea   : > { %2018 = vmatpush3.xpose.msk.msra.mxu0 %vm671_vm4, %v1001_v41  ;;  %2019 = vmatprep.mubr.msk.f32.mxu0 %vm2505_vm3, %v2502_v7  ;;  %v1349_v41 = vld [vmem:[%s3043_s3 + $0x10] sm:$0xff] }
 0x2eb   : > { %2027 = vmatprep.subr.mxu0 %v2502_v7 }
 0x2ed   : > { %2020 = vmatmul.mubr.msk.f32.vlgmr.msra.gmra.mxu0 %vm671_vm4, %v999_v42  ;;  %v1167_v43 = vpop.permute.xlu1 %1166  ;;  %v1348_v42 = vld [vmem:[%s3043_s3 + $0x8] sm:$0xff] }
 0x2ee   : > { %2028 = vmatpush3.xpose.msk.msra.mxu0 %vm671_vm4, %v1167_v43  ;;  %2029 = vmatprep.mubr.msk.f32.mxu0 %vm2505_vm3, %v2502_v7  ;;  %v1347_v43 = vld [vmem:[%s3043_s3] sm:$0xff] }
 0x2ef   : > { %2037 = vmatprep.subr.mxu0 %v2502_v7 }
 0x2f1   : > { %2030 = vmatmul.mubr.msk.f32.vlgmr.msra.gmra.mxu0 %vm671_vm4, %v1165_v44 }
 0x2f2   : > { %2045 = vmatprep.mubr.msk.f32.mxu0 %vm2505_vm3, %v2502_v7  ;;  %2038 = vmatpush3.msra.mxu0 %v1350_v36 }
 0x2f3   : > { %2039 = vmatprep.subr.mxu0 %v2502_v7 }
 0x2f4   : > { %2040 = vmatpush3.msra.mxu0 %v1349_v41 }
 0x2f5   : > { %2041 = vmatprep.subr.mxu0 %v2502_v7 }
 0x2f6   : > { %2042 = vmatpush3.msra.mxu0 %v1348_v42 }
 0x2f7   : > { %2043 = vmatprep.subr.mxu0 %v2502_v7 }
 0x2f8   : > { %2044 = vmatpush3.msra.mxu0 %v1347_v43 }
 0x2f9   : > { %2059 = vmatprep.subr.mxu0 %v2502_v7 }
 0x3a5   : > { %v743_v46 = vpop.f32.mrf.mxu0 }
 0x3a6   : > { %v744_v47 = vadd.f32 %v743_v46, %v670_v45 }
 0x3a7   : > { %v2001_v48 = vpop.f32.mrf.mxu0 }
 0x3a8   : > { %v747_v49 = vsel %vm671_vm4, %v744_v47, -inf }
 0x3a9   : > { %748 = vmax.xlane.f32.xlu1 %v747_v49  ;;  %v906_v50 = vpop.f32.mrf.mxu0 }
 0x3aa   : > { %v907_v51 = vadd.f32 %v906_v50, %v670_v45 }
 0x3ab   : > { %v2011_v52 = vpop.f32.mrf.mxu0 }
 0x3ac   : > { %v910_v53 = vsel %vm671_vm4, %v907_v51, -inf }
 0x3ad   : > { %911 = vmax.xlane.f32.xlu0 %v910_v53  ;;  %v1072_v54 = vpop.f32.mrf.mxu0 }
 0x3ae   : > { %v1073_v55 = vadd.f32 %v1072_v54, %v670_v45 }
 0x3af   : > { %v2021_v56 = vpop.f32.mrf.mxu0 }
 0x3b0   : > { %v1076_v57 = vsel %vm671_vm4, %v1073_v55, -inf }
 0x3b1   : > { %1077 = vmax.xlane.f32.xlu0 %v1076_v57  ;;  %v1238_v58 = vpop.f32.mrf.mxu0 }
 0x3b2   : > { %v1239_v59 = vadd.f32 %v1238_v58, %v670_v45 }
 0x3b3   : > { %v2031_v60 = vpop.f32.mrf.mxu0 }
 0x3b4   : > { %v1242_v61 = vsel %vm671_vm4, %v1239_v59, -inf  ;;  %v1529_v60 = vld [vmem:[#allocation10 + $0x18] sm:$0xff] }
 0x3b5   : > { %1243 = vmax.xlane.f32.xlu1 %v1242_v61  ;;  %v1451_v61 = vld [vmem:[#allocation8 + $0x10] sm:$0xff] }
 0x3c6   : > { %922 = vrot.lane.b32.xlu1 %v2806_v26, %s2512_s8 }
 0x432   : > { %v749_v62 = vpop.xlane.xlu1 %748 }
 0x433   : > { %v750_v63 = vsub.f32 %v744_v47, %v749_v62  ;;  %v1528_v62 = vld [vmem:[#allocation10 + $0x10] sm:$0xff] }
 0x435   : > { %v751_v1 = vmul.f32 1.442695, %v750_v63  ;;  %v1450_v63 = vld [vmem:[#allocation8 + $0x8] sm:$0xff] }
 0x436   : > { %v912_v2 = vpop.xlane.xlu0 %911 }
 0x437   : > { %2209 = vpow2.f32 %v751_v1  ;;  %v913_v3 = vsub.f32 %v907_v51, %v912_v2  ;;  %v1449_v1 = vld [vmem:[#allocation8] sm:$0xff] }
 0x438   : > { %v1526_v2 = vld [vmem:[#allocation10] sm:$0xff] }
 0x439   : > { %v914_v4 = vmul.f32 1.442695, %v913_v3 }
 0x43a   : > { %v1078_v15 = vpop.xlane.xlu0 %1077 }
 0x43b   : > { %2211 = vpow2.f32 %v914_v4  ;;  %v1079_v16 = vsub.f32 %v1073_v55, %v1078_v15 }
 0x43d   : > { %v1080_v17 = vmul.f32 1.442695, %v1079_v16  ;;  %v1615_v16 = vld [vmem:[%s3050_s10 + $0x38] sm:$0xff] }
 0x43e   : > { %v1244_v5 = vpop.xlane.xlu1 %1243 }
 0x43f   : > { %v1245_v6 = vsub.f32 %v1239_v59, %v1244_v5  ;;  %v1452_v59 = vld [vmem:[#allocation8 + $0x18] sm:$0xff] }
 0x441   : > { %v1246_v8 = vmul.f32 1.442695, %v1245_v6 }
 0x442   : > { %v923_v20 = vpop.permute.xlu1 %922 }
 0x443   : > { %2213 = vpow2.f32 %v1246_v8 }
 0x444   : > { %v2210_v9 = vpop.eup %2209  ;;  %2215 = vpow2.f32 %v1080_v17  ;;  %v1614_v17 = vld [vmem:[%s3050_s10 + $0x30] sm:$0xff] }
 0x445   : > { %v753_v10 = vsel %vm671_vm4, %v2210_v9, 0.0 }
 0x446   : > { %754 = vadd.xlane.f32.xlu0 %v753_v10 }
 0x448   : > { %v2212_v11 = vpop.eup %2211 }
 0x449   : > { %v916_v12 = vsel %vm671_vm4, %v2212_v11, 0.0 }
 0x44a   : > { %917 = vadd.xlane.f32.xlu1 %v916_v12  ;;  %v1944_v12 = vld [vmem:[%s3047_s7] ss:$0 sm:$0xff] }
 0x450   : > { %v2214_v13 = vpop.eup %2213 }
 0x451   : > { %v1248_v14 = vsel %vm671_vm4, %v2214_v13, 0.0  ;;  %v2216_v18 = vpop.eup %2215 }
 0x452   : > { %1249 = vadd.xlane.f32.xlu1 %v1248_v14  ;;  %v1082_v19 = vsel %vm671_vm4, %v2216_v18, 0.0 }
 0x45c   : > { %666 = vrot.lane.b32.xlu0 %v2806_v26, %s2513_s9  ;;  %s2517_s9 = smov 16  }
 0x463   : > { %1088 = vrot.lane.b32.xlu1 %v2806_v26, %s2514_s15  ;;  %s2518_s15 = smov 24  }
 0x47b   : > { %1083 = vadd.xlane.f32.xlu0 %v1082_v19  ;;  %v1612_v19 = vld [vmem:[%s3050_s10 + $0x20] sm:$0xff] }
 0x491   : > { %1254 = vrot.lane.b32.xlu0 %v2806_v26, %s2515_s17  ;;  %s1742_s17 = sshll.u32 %s527_s29, 4  ;;  %s1743_s17 = int_to_ptr.vmem [resolvable:$true] %s1742_s17 }
 0x4cf   : > { %v755_v21 = vpop.xlane.xlu0 %754 }
 0x4d0   : > { %2217 = vrcp.f32 %v755_v21  ;;  %v1610_v21 = vld [vmem:[%s3050_s10 + $0x10] sm:$0xff] }
 0x4d3   : > { %v667_v22 = vpop.permute.xlu0 %666  ;;  %v918_v23 = vpop.xlane.xlu1 %917 }
 0x4d4   : > { %669 = vst.msk [vmem:[%s527_s29] sm:$0xff] %vm531_vm0, %v667_v22  ;;  %2219 = vrcp.f32 %v918_v23  ;;  %2003 = vmatpush3.msra.mxu1 %v667_v22  ;;  %v1609_v22 = vld [vmem:[%s3050_s10 + $0x8] sm:$0xff]  ;;  %v1608_v23 = vld [vmem:[%s3050_s10] sm:$0xff] }
 0x4d5   : > { %2012 = vmatprep.subr.mxu1 %v2502_v7 }
 0x4db   : > { %v1250_v25 = vpop.xlane.xlu1 %1249 }
 0x4dd   : > { %v2218_v24 = vpop.eup %2217 }
 0x4de   : > { %v758_v27 = vmul.f32 %v2218_v24, %v2210_v9 }
 0x4df   : > { %v1089_v29 = vpop.permute.xlu1 %1088 }
 0x4e0   : > { %2005 = vmatmul.mubr.msk.f32.vlgmr.msra.gmra.mxu1 %vm671_vm4, %v758_v27 }
 0x4e1   : > { %v2220_v28 = vpop.eup %2219  ;;  %2013 = vmatpush3.msra.mxu1 %v923_v20  ;;  %2014 = vmatprep.mubr.msk.f32.mxu1 %vm2505_vm3, %v2502_v7  ;;  %v1611_v20 = vld [vmem:[%s3050_s10 + $0x18] sm:$0xff] }
 0x4e2   : > { %2022 = vmatprep.subr.mxu1 %v2502_v7  ;;  %v921_v26 = vmul.f32 %v2220_v28, %v2212_v11 }
 0x4e4   : > { %2015 = vmatmul.mubr.msk.f32.vlgmr.msra.gmra.mxu1 %vm671_vm4, %v921_v26 }
 0x4e5   : > { %2023 = vmatpush3.msra.mxu1 %v1089_v29  ;;  %2024 = vmatprep.mubr.msk.f32.mxu1 %vm2505_vm3, %v2502_v7 }
 0x4e6   : > { %2032 = vmatprep.subr.mxu1 %v2502_v7 }
 0x504   : > { %v1084_v30 = vpop.xlane.xlu0 %1083 }
 0x505   : > { %2221 = vrcp.f32 %v1084_v30 }
 0x506   : > { %2223 = vrcp.f32 %v1250_v25 }
 0x508   : > { %v1255_v34 = vpop.permute.xlu0 %1254 }
 0x512   : > { %v2222_v31 = vpop.eup %2221 }
 0x513   : > { %v1087_v32 = vmul.f32 %v2222_v31, %v2216_v18  ;;  %v2224_v33 = vpop.eup %2223  ;;  %v1613_v18 = vld [vmem:[%s3050_s10 + $0x28] sm:$0xff] }
 0x514   : > { %v1253_v35 = vmul.f32 %v2224_v33, %v2214_v13 }
 0x515   : > { %2025 = vmatmul.mubr.msk.f32.vlgmr.msra.gmra.mxu1 %vm671_vm4, %v1087_v32 }
 0x516   : > { %2033 = vmatpush3.msra.mxu1 %v1255_v34  ;;  %2034 = vmatprep.mubr.msk.f32.mxu1 %vm2505_vm3, %v2502_v7 }
 0x517   : > { %2048 = vmatprep.subr.mxu1 %v2502_v7 }
 0x519   : > { %2035 = vmatmul.mubr.msk.f32.vlgmr.msra.gmra.mxu1 %vm671_vm4, %v1253_v35 }
 0x51a   : > { %2056 = vmatprep.mubr.msk.f32.mxu1 %vm2505_vm3, %v2502_v7  ;;  %2049 = vmatpush3.msra.mxu1 %v1452_v59 }
 0x51b   : > { %2050 = vmatprep.subr.mxu1 %v2502_v7 }
 0x51c   : > { %2051 = vmatpush3.msra.mxu1 %v1451_v61 }
 0x51d   : > { %2052 = vmatprep.subr.mxu1 %v2502_v7 }
 0x51e   : > { %2053 = vmatpush3.msra.mxu1 %v1450_v63 }
 0x51f   : > { %2054 = vmatprep.subr.mxu1 %v2502_v7 }
 0x520   : > { %2055 = vmatpush3.msra.mxu1 %v1449_v1 }
 0x521   : > { %2070 = vmatprep.subr.mxu1 %v2502_v7 }
 0x5a0   : > { %v828_v37 = vpop.f32.mrf.mxu1 }
 0x5a2   : > { %v2006_v38 = vpop.f32.mrf.mxu1 }
 0x5a4   : > { %v994_v39 = vpop.f32.mrf.mxu1 }
 0x5a5   : > { %1331 = vrot.lane.b32.xlu1 %v994_v39, %s2516_s21  ;;  %s2369_s21 = sshll.u32 %s2519_s14, 4  ;;  %s2370_s21 = int_to_ptr.vmem [resolvable:$false] %s2369_s21 }
 0x5a6   : > { %v2016_v40 = vpop.f32.mrf.mxu1  ;;  %s2371_s18 = scalar_lea.vmem %s2370_s21, 256 }
 0x5d5   : > { %v1160_v44 = vpop.f32.mrf.mxu1 }
 0x5d6   : > { %1335 = vrot.lane.b32.xlu0 %v1160_v44, %s2517_s9  ;;  %s2952_s9 = scalar_lea.hbm %s3052_s12, %s2946_s28 }
 0x5d7   : > { %v2026_v45 = vpop.f32.mrf.mxu1 }
 0x5d9   : > { %v1326_v46 = vpop.f32.mrf.mxu1 }
 0x5da   : > { %1339 = vrot.lane.b32.xlu1 %v1326_v46, %s2518_s15  ;;  %s1729_s15 = sshll.u32 %s520_s6, 4  ;;  %s1730_s15 = int_to_ptr.vmem [resolvable:$true] %s1729_s15 }
 0x5db   : > { %v2036_v47 = vpop.f32.mrf.mxu1  ;;  %s2365_s23 = scalar_lea.vmem %s1730_s15, 128  ;;  %p2372_p12 = scmp.lt.s32.totalorder %s1730_s15, %s2370_s21 }
 0x5dc   : > { %p2366_p8 = scmp.ne.s32.totalorder %s1730_s15, %s2365_s23  ;;  %p2373_p2 = scmp.lt.s32.totalorder %s2371_s18, %s2365_s23 }
 0x5de   : > { %p2367_p10 = pnand %p2366_p8, %p3089_p7  ;;  %p2374_p9 = por %p2373_p2, %p2372_p12 }
 0x5e0   : > { %p2368_p0 = pneg %p2367_p10 }
 0x5e2   : > { %p2375_p11 = pnand %p2374_p9, %p2368_p0 }
 0x617   : > { %v1332_v48 = vpop.permute.xlu1 %1331 }
 0x618   : > { %v1342_v50 = vsel %vm671_vm4, %v828_v37, %v1332_v48 }
 0x648   : > { %v1336_v49 = vpop.permute.xlu0 %1335 }
 0x649   : > { %v1344_v51 = vsel %vm1343_vm5, %v1342_v50, %v1336_v49 }
 0x64c   : > { %v1340_v52 = vpop.permute.xlu1 %1339 }
 0x64d   : > { %v1346_v53 = vsel %vm1345_vm6, %v1344_v51, %v1340_v52 }
 0x64e   : > { %2046 = vmatmul.mubr.msk.f32.vlgmr.msra.gmra.mxu0 %vm531_vm0, %v1346_v53 }
 0x64f   : > { %2067 = vmatprep.mubr.msk.f32.mxu0 %vm2505_vm3, %v2502_v7  ;;  %2060 = vmatpush3.msra.mxu0 %v1529_v60 }
 0x650   : > { %2061 = vmatprep.subr.mxu0 %v2502_v7 }
 0x651   : > { %2062 = vmatpush3.msra.mxu0 %v1528_v62 }
 0x652   : > { %2063 = vmatprep.subr.mxu0 %v2502_v7 }
 0x70e   : > { %v1420_v54 = vpop.f32.mrf.mxu0 }
 0x70f   : > { %v2893_v55 = vadd.f32 %v1420_v54, %v2765_v0  ;;  %v1527_v0 = vld [vmem:[#allocation10 + $0x8] sm:$0xff] }
 0x710   : > { %v2047_v56 = vpop.f32.mrf.mxu0  ;;  %2064 = vmatpush3.msra.mxu0 %v1527_v0 }
 0x711   : > { %v1426_v57 = vmul.f32 %v2893_v55, %v2893_v55  ;;  %2065 = vmatprep.subr.mxu0 %v2502_v7  ;;  %v1444_v13 = vmul.f32 %v1944_v12, %v2893_v55 }
 0x712   : > { %2066 = vmatpush3.msra.mxu0 %v1526_v2 }
 0x713   : > { %v1427_v58 = vsel %vm531_vm0, %v1426_v57, 0.0 }
 0x714   : > { %1428 = vadd.xlane.f32.xlu0 %v1427_v58 }
 0x79d   : > { %v1429_v3 = vpop.xlane.xlu0 %1428 }
 0x79e   : > { %2225 = vrsqrt.f32 %v1429_v3  ;;  %vm1432_vm7 = vcmp.eq.f32.partialorder %v1429_v3, inf  ;;  %v1435_v6 = vand.u32 2147483648, %v1429_v3  ;;  %vm1434_vm8 = vcmp.eq.f32.partialorder %v1429_v3, 0.0 }
 0x7ab   : > { %v2226_v4 = vpop.eup %2225 }
 0x7ac   : > { %v1431_v5 = vmul.f32 %v2226_v4, %v1429_v3 }
 0x7ae   : > { %v1433_v8 = vsel %vm1432_vm7, %v1429_v3, %v1431_v5 }
 0x7af   : > { %v1436_v9 = vsel %vm1434_vm8, %v1435_v6, %v1433_v8 }
 0x7b0   : > { %v1437_v10 = vmul.f32 0.17677669, %v1436_v9 }
 0x7b2   : > { %v1445_v11 = vadd.f32 1e-08, %v1437_v10 }
 0x7b4   : > { %2227 = vrcp.f32 %v1445_v11 }
 0x7c1   : > { %v2228_v14 = vpop.eup %2227 }
 0x7c2   : > { %v1448_v15 = vmul.f32 %v2228_v14, %v1444_v13 }
 0x7c4   : > { %2057 = vmatmul.mubr.msk.f32.vlgmr.msra.gmra.mxu1 %vm531_vm0, %v1448_v15  ;;  %2068 = vmatmul.mubr.msk.f32.vlgmr.msra.gmra.mxu0 %vm531_vm0, %v1448_v15 }
 0x7c5   : > { %2086 = vmatprep.mubr.msk.f32.mxu1 %vm2505_vm3, %v2502_v7  ;;  %2071 = vmatpush3.msra.mxu1 %v1615_v16 }
 0x7c6   : > { %2072 = vmatprep.subr.mxu1 %v2502_v7 }
 0x7c7   : > { %2073 = vmatpush3.msra.mxu1 %v1614_v17 }
 0x7c8   : > { %2074 = vmatprep.subr.mxu1 %v2502_v7 }
 0x7c9   : > { %2075 = vmatpush3.msra.mxu1 %v1613_v18 }
 0x7ca   : > { %2076 = vmatprep.subr.mxu1 %v2502_v7 }
 0x7cb   : > { %2077 = vmatpush3.msra.mxu1 %v1612_v19 }
 0x7cc   : > { %2078 = vmatprep.subr.mxu1 %v2502_v7 }
 0x7cd   : > { %2079 = vmatpush3.msra.mxu1 %v1611_v20 }
 0x7ce   : > { %2080 = vmatprep.subr.mxu1 %v2502_v7 }
 0x7cf   : > { %2081 = vmatpush3.msra.mxu1 %v1610_v21 }
 0x7d0   : > { %2082 = vmatprep.subr.mxu1 %v2502_v7 }
 0x7d1   : > { %2083 = vmatpush3.msra.mxu1 %v1609_v22 }
 0x7d2   : > { %2084 = vmatprep.subr.mxu1 %v2502_v7 }
 0x7d3   : > { %2085 = vmatpush3.msra.mxu1 %v1608_v23 }
 0x884   : > { %v1522_v24 = vpop.f32.mrf.mxu1  ;;  %v1596_v25 = vpop.f32.mrf.mxu0 }
 0x885   : > { %v1947_v27 = vmul.f32 -1.442695, %v1596_v25 }
 0x886   : > { %v2058_v28 = vpop.f32.mrf.mxu1  ;;  %v2069_v26 = vpop.f32.mrf.mxu0 }
 0x887   : > { %2229 = vpow2.f32 %v1947_v27 }
 0x894   : > { %v2230_v29 = vpop.eup %2229 }
 0x895   : > { %v1603_v30 = vadd.f32 1.0, %v2230_v29 }
 0x897   : > { %2231 = vrcp.f32 %v1603_v30 }
 0x8a4   : > { %v2232_v31 = vpop.eup %2231 }
 0x8a5   : > { %v1606_v32 = vmul.f32 %v2232_v31, %v1596_v25 }
 0x8a7   : > { %v1607_v33 = vmul.f32 %v1606_v32, %v1522_v24 }
 0x8a9   : > { %2087 = vmatmul.mubr.msk.f32.vlgmr.msra.gmra.mxu1 %vm1616_vm9, %v1607_v33 }
 0x8aa   : > { %2378 = shalt.err (!%p2375_p11)
}
 0x8ab   : > { %s2379_s6 = scalar_lea.hbm %s2952_s9, 128  ;;  %s2383_s30 = scalar_lea.hbm %s3052_s12, 256 }
 0x8ac   : > { %p2380_p13 = scmp.ne.s32.totalorder %s2952_s9, %s2379_s6  ;;  %p2384_p4 = scmp.lt.s32.totalorder %s2952_s9, %s3052_s12 }
 0x8ad   : > { %p2385_p6 = scmp.lt.s32.totalorder %s2383_s30, %s2379_s6 }
 0x8ae   : > { %p2381_p1 = pnand %p2380_p13, %p3089_p7 }
 0x8af   : > { %p2386_p5 = por %p2385_p6, %p2384_p4 }
 0x8b0   : > { %p2382_p3 = pneg %p2381_p1 }
 0x8b2   : > { %p2387_p8 = pnand %p2386_p5, %p2382_p3 }
 0x8b4   : > { %2390 = shalt.err (!%p2387_p8)
}
 0x8b5   : > { %2108 = dma.vmem_to_hbm [thread:$0]  (%p3089_p7), %s1730_s15, 128, %s2952_s9, %s2958_s22  }
 0x8b6   : > { %s1740_s21 = scalar_lea.hbm %s3053_s13, %s2946_s28  ;;  %s2391_s18 = scalar_lea.vmem %s1743_s17, 128 }
 0x8b7   : > { %p2392_p10 = scmp.ne.s32.totalorder %s1743_s17, %s2391_s18  ;;  %s2520_s6 = smov [#allocation14]  }
 0x8b8   : > { %s2395_s29 = sshll.u32 %s2520_s6, 4  ;;  %s2396_s29 = int_to_ptr.vmem [resolvable:$false] %s2395_s29 }
 0x8b9   : > { %p2393_p0 = pnand %p2392_p10, %p3089_p7  ;;  %s2397_s16 = scalar_lea.vmem %s2396_s29, 256 }
 0x8ba   : > { %p2398_p2 = scmp.lt.s32.totalorder %s1743_s17, %s2396_s29  ;;  %p2399_p9 = scmp.lt.s32.totalorder %s2397_s16, %s2391_s18 }
 0x8bb   : > { %p2394_p12 = pneg %p2393_p0 }
 0x8bc   : > { %p2400_p11 = por %p2399_p9, %p2398_p2 }
 0x8be   : > { %p2401_p13 = pnand %p2400_p11, %p2394_p12 }
 0x8c0   : > { %2404 = shalt.err (!%p2401_p13)
}
 0x8c1   : > { %s2405_s9 = scalar_lea.hbm %s1740_s21, 128  ;;  %s2409_s20 = scalar_lea.hbm %s3053_s13, 256 }
 0x8c2   : > { %p2406_p1 = scmp.ne.s32.totalorder %s1740_s21, %s2405_s9  ;;  %p2410_p6 = scmp.lt.s32.totalorder %s1740_s21, %s3053_s13 }
 0x8c3   : > { %p2411_p5 = scmp.lt.s32.totalorder %s2409_s20, %s2405_s9 }
 0x8c4   : > { %p2407_p3 = pnand %p2406_p1, %p3089_p7 }
 0x8c5   : > { %p2412_p8 = por %p2411_p5, %p2410_p6 }
 0x8c6   : > { %p2408_p4 = pneg %p2407_p3 }
 0x8c8   : > { %p2413_p10 = pnand %p2412_p8, %p2408_p4 }
 0x8ca   : > { %2416 = shalt.err (!%p2413_p10)
}
 0x8cb   : > { %2109 = dma.vmem_to_hbm [thread:$0]  (%p3089_p7), %s1743_s17, 128, %s1740_s21, %s2958_s22  }
 0x8cc   : > { %s513_s14 = scalar_lea.vmem [#allocation11], %s2749_s4  ;;  %s3000_s16 = scalar_lea.hbm %s3051_s11, %s2946_s28 }
 0x8cd   : > { %s1716_s18 = sshll.u32 %s513_s14, 4  ;;  %s1693_s9 = scalar_lea.sflag [#allocation4], %s2746_s27  ;;  %s1717_s18 = int_to_ptr.vmem [resolvable:$true] %s1716_s18 }
 0x8ce   : > { %s2417_s15 = scalar_lea.vmem %s1717_s18, 128  ;;  %s2521_s4 = smov [#allocation11]  }
 0x8cf   : > { %p2418_p0 = scmp.ne.s32.totalorder %s1717_s18, %s2417_s15  ;;  %s2421_s17 = sshll.u32 %s2521_s4, 4  ;;  %s2422_s17 = int_to_ptr.vmem [resolvable:$false] %s2421_s17 }
 0x8d0   : > { %s2423_s22 = scalar_lea.vmem %s2422_s17, 256  ;;  %p2424_p9 = scmp.lt.s32.totalorder %s1717_s18, %s2422_s17 }
 0x8d1   : > { %p2419_p12 = pnand %p2418_p0, %p3089_p7  ;;  %p2425_p11 = scmp.lt.s32.totalorder %s2423_s22, %s2417_s15 }
 0x8d3   : > { %p2420_p2 = pneg %p2419_p12  ;;  %p2426_p13 = por %p2425_p11, %p2424_p9 }
 0x8d5   : > { %p2427_p1 = pnand %p2426_p13, %p2420_p2 }
 0x969   : > { %v1686_v7 = vpop.f32.mrf.mxu1 }
 0x96a   : > { %v1690_v34 = vadd.f32 %v1686_v7, %v2893_v55 }
 0x96b   : > { %v2088_v35 = vpop.f32.mrf.mxu1 }
 0x96c   : > { %1691 = vst.msk [vmem:[%s513_s14] sm:$0xff] %vm531_vm0, %v1690_v34 }
 0x96d   : > { %2430 = shalt.err (!%p2427_p1)
}
 0x96e   : > { %s2431_s28 = scalar_lea.hbm %s3000_s16, 128  ;;  %s2435_s30 = scalar_lea.hbm %s3051_s11, 256 }
 0x96f   : > { %p2432_p3 = scmp.ne.s32.totalorder %s3000_s16, %s2431_s28  ;;  %p2436_p5 = scmp.lt.s32.totalorder %s3000_s16, %s3051_s11 }
 0x970   : > { %p2437_p8 = scmp.lt.s32.totalorder %s2435_s30, %s2431_s28 }
 0x971   : > { %p2433_p4 = pnand %p2432_p3, %p3089_p7 }
 0x972   : > { %p2438_p10 = por %p2437_p8, %p2436_p5 }
 0x973   : > { %p2434_p6 = pneg %p2433_p4 }
 0x975   : > { %p2439_p0 = pnand %p2438_p10, %p2434_p6 }
 0x977   : > { %2442 = shalt.err (!%p2439_p0)
}
 0x978   : > { %2107 = dma.vmem_to_hbm [thread:$0]  (%p3089_p7), %s1717_s18, 128, %s3000_s16, %s1693_s9  }
 0x979 PF: > { %s3090_s23 = sld [smem:[#allocation21_spill]]  ;;  %s1754_s14 = sand.u32 1, %s2481_s25  }
 0x97a   : > { %p3091_p12 = scmp.ne.s32.totalorder %s3081_s19, 0  ;;  %s1755_s6 = scalar_lea.sflag [#allocation4], %s1754_s14 }
 0x97f   : > { %p3092_p2 = scmp.ge.s32.totalorder %s3090_s23, 2 }
 0x981   : > { %p2131_p9 = pnand %p3092_p2, %p3091_p12 }
 0x983   : > { %p2132_p11 = pneg %p2131_p9 }
 0x985   : > { %2472 = dma.done.wait (%p2132_p11), %s1755_s6, 128  }
 0x986   : > { %2474 = vsyncadd (%p2132_p11), %s1755_s6, 4294967168  ;;  %s3093_s29 = sadd.s32 4294967294, %s3090_s23  }
 0x987   : > { %s1763_s15 = sand.u32 1, %s3093_s29  }
 0x988   : > { %s1764_s4 = scalar_lea.sflag [#allocation13], %s1763_s15 }
 0x989   : > { %2476 = dma.done.wait (%p2132_p11), %s1764_s4, 256  }
 0x98a   : > { %2478 = vsyncadd (%p2132_p11), %s1764_s4, 4294967040  ;;  %s3094_s28 = sld [smem:[#allocation22_spill]]  ;;  %s3097_s25 = smov %s2485_s26 }
 0x98b   : > { %s3095_s24 = sld [smem:[#allocation20_spill]] }
 0x98c   : > { %s3096_s27 = sld [smem:[#allocation23_spill]] }
 0x990   : > { %p32_p7 = scmp.ge.s32.totalorder %s3094_s28, 4  }
 0x991   : > { %s3098_s26 = smov %s3095_s24 }
 0x992   :  { %34 = sbr.rel (!%p32_p7) target bundleno = 14 (0xe), region = 157 }
 0x997   :  { %1778 = vsyncpa [#allocation3], 1 }
 0x998   :  { %1780 = vsyncpa [#allocation3 + $0x1], 1 }
 0x999   :  { %1781 = vsyncpa [#allocation6], 1 }
 0x99a   :  { %1782 = vsyncpa [#allocation9], 1 }
 0x99b   :  { %1783 = vsyncpa [#allocation4], 1 }
 0x99c   :  { %1785 = vsyncpa [#allocation4 + $0x1], 1 }
 0x99d   :  { %1786 = vsyncpa [#allocation13], 1 }
 0x99e   :  { %1788 = vsyncpa [#allocation13 + $0x1], 1 }

</bundles_post_ra>
